<compile_context>
chip_gen: v6e
topology: v6e:2x2x1
jax: 0.10.0
libtpu: 0.0.40
codegen_flags: <defaults>
</compile_context>

<pallas_src>
import math
import functools

import jax
import jax.numpy as jnp
from jax import lax
from jax.experimental import pallas as pl
from jax.experimental.pallas import tpu as pltpu


def _round_up(x, m):
    return ((x + m - 1) // m) * m


def _pick_tile(n, candidates):
    for c in candidates:
        if n >= c and n % c == 0:
            return c
    return n


# ---------------------------------------------------------------------------
# Linear kernel: y = x @ W + b   (QKV projection and output projection)
#   x block: (1, row_tile, Cin)  bf16
#   W block: (Cin, cout_tile)    bf16   (resident across batch/row tiles)
#   b block: (1, cout_tile)      f32
# ---------------------------------------------------------------------------
def _linear_kernel(x_ref, w_ref, b_ref, o_ref):
    y = jnp.dot(x_ref[0], w_ref[...], preferred_element_type=jnp.float32)
    y = y + b_ref[...]                                     # bias in f32
    o_ref[0] = y.astype(o_ref.dtype)


def _linear(x, w, b, *, out_dtype, row_tile):
    B, T, Cin = x.shape
    Cout = w.shape[1]
    cout_tile = _pick_tile(Cout, (512, 256, 128))          # lane-tile the outputs
    b2 = b.reshape(1, Cout).astype(jnp.float32)
    # TODO(synk): for very large Cin add a K grid axis with an f32 accumulator
    # scratch (pl.when init/finalize); bf16 (Cin, cout_tile) blocks fit VMEM here.
    return pl.pallas_call(
        _linear_kernel,
        out_shape=jax.ShapeDtypeStruct((B, T, Cout), out_dtype),
        grid_spec=pltpu.PrefetchScalarGridSpec(
            num_scalar_prefetch=0,
            grid=(B, T // row_tile, Cout // cout_tile),
            in_specs=[
                pl.BlockSpec((1, row_tile, Cin), lambda bi, ti, ci: (bi, ti, 0)),
                pl.BlockSpec((Cin, cout_tile), lambda bi, ti, ci: (0, ci)),
                pl.BlockSpec((1, cout_tile), lambda bi, ti, ci: (0, ci)),
            ],
            out_specs=pl.BlockSpec((1, row_tile, cout_tile),
                                   lambda bi, ti, ci: (bi, ti, ci)),
        ),
        compiler_params=pltpu.CompilerParams(
            dimension_semantics=("parallel", "parallel", "parallel"),
            vmem_limit_bytes=48 * 1024 * 1024,
        ),
    )(x, w, b2)


# ---------------------------------------------------------------------------
# Flash attention with online softmax on a triangular (causal) schedule.
# Grid = (B, H, n_tri) where n_tri = n_t*(n_t+1)//2; scalar-prefetched qi/ki
# tables map the flat triangular index to (q_tile, kv_tile).
# ---------------------------------------------------------------------------
def _flash_attn_kernel(qi_map_ref, ki_map_ref, q_ref, k_ref, v_ref, o_ref,
                       m_scr, l_scr, acc_scr, *, tile):
    t = pl.program_id(2)
    qi = qi_map_ref[t]
    ki = ki_map_ref[t]

    @pl.when(ki == 0)
    def _init():
        m_scr[...] = jnp.full_like(m_scr, -1e30)
        l_scr[...] = jnp.zeros_like(l_scr)
        acc_scr[...] = jnp.zeros_like(acc_scr)

    # q/k/v arrive as bf16 (scale already folded into the QKV projection).
    q = q_ref[0, 0]                                        # (tile, hd)
    k = k_ref[0, 0]
    v = v_ref[0, 0]

    # Contract last dims directly -- no materialized K transpose.
    s = lax.dot_general(q, k, (((1,), (1,)), ((), ())),
                        preferred_element_type=jnp.float32)   # (tile, tile)

    # Causal mask via global indices; a no-op select on below-diagonal blocks.
    row = lax.broadcasted_iota(jnp.int32, (tile, tile), 0) + qi * tile
    col = lax.broadcasted_iota(jnp.int32, (tile, tile), 1) + ki * tile
    s = jnp.where(col <= row, s, jnp.float32(-1e30))

    m_prev = m_scr[...]
    m_new = jnp.maximum(m_prev, jnp.max(s, axis=-1, keepdims=True))
    alpha = jnp.exp(m_prev - m_new)
    p = jnp.exp(s - m_new)                                  # softmax math in f32
    l_scr[...] = alpha * l_scr[...] + jnp.sum(p, axis=-1, keepdims=True)
    acc_scr[...] = alpha * acc_scr[...] + jnp.dot(
        p.astype(jnp.bfloat16), v, preferred_element_type=jnp.float32)
    m_scr[...] = m_new

    # Diagonal tile is the last KV tile for this query block -> finalize.
    @pl.when(ki == qi)
    def _finalize():
        inv_l = pl.reciprocal(l_scr[...], approx=True)      # EUP slot, ~free
        o_ref[0, 0] = (acc_scr[...] * inv_l).astype(o_ref.dtype)


def _flash_attention(q, k, v, *, tile):
    B, H, T, hd = q.shape
    n_t = T // tile
    n_tri = n_t * (n_t + 1) // 2

    # Triangular schedule lookup tables (static at trace time).
    qi_list, ki_list = [], []
    for qi in range(n_t):
        for ki in range(qi + 1):
            qi_list.append(qi)
            ki_list.append(ki)
    qi_map = jnp.asarray(qi_list, dtype=jnp.int32)
    ki_map = jnp.asarray(ki_list, dtype=jnp.int32)

    kernel = functools.partial(_flash_attn_kernel, tile=tile)
    return pl.pallas_call(
        kernel,
        out_shape=jax.ShapeDtypeStruct((B, H, T, hd), q.dtype),
        grid_spec=pltpu.PrefetchScalarGridSpec(
            num_scalar_prefetch=2,
            grid=(B, H, n_tri),
            in_specs=[
                # Q tile resident across the KV sweep for a given qi.
                pl.BlockSpec((1, 1, tile, hd),
                             lambda b, h, t, qi_m, ki_m: (b, h, qi_m[t], 0)),
                pl.BlockSpec((1, 1, tile, hd),
                             lambda b, h, t, qi_m, ki_m: (b, h, ki_m[t], 0)),
                pl.BlockSpec((1, 1, tile, hd),
                             lambda b, h, t, qi_m, ki_m: (b, h, ki_m[t], 0)),
            ],
            out_specs=pl.BlockSpec((1, 1, tile, hd),
                                   lambda b, h, t, qi_m, ki_m: (b, h, qi_m[t], 0)),
            scratch_shapes=[
                pltpu.VMEM((tile, 1), jnp.float32),    # running max
                pltpu.VMEM((tile, 1), jnp.float32),    # running sum
                pltpu.VMEM((tile, hd), jnp.float32),   # output accumulator
            ],
        ),
        compiler_params=pltpu.CompilerParams(
            dimension_semantics=("parallel", "parallel", "arbitrary"),
            vmem_limit_bytes=48 * 1024 * 1024,
        ),
    )(qi_map, ki_map, q, k, v)


# ---------------------------------------------------------------------------
# Full forward: QKV projection -> per-head causal flash attention -> projection
# ---------------------------------------------------------------------------
def causal_self_attention(x, w_qkv, b_qkv, w_proj, b_proj, *, n_head):
    """x: (B, T, C); w_qkv: (C, 3C); b_qkv: (3C,); w_proj: (C, C); b_proj: (C,)."""
    B, T, C = x.shape
    assert C % n_head == 0, "n_embd must be divisible by n_head"
    hd = C // n_head
    in_dtype = x.dtype

    # Fold the 1/sqrt(hd) attention scale into the Q slice of the projection.
    scale = 1.0 / math.sqrt(hd)
    w_qkv = w_qkv.at[:, :C].multiply(scale)
    b_qkv = b_qkv.at[:C].multiply(scale)

    # bf16 residency for all matmul operands; bias/accumulators stay f32.
    x_bf = x.astype(jnp.bfloat16)
    w_qkv_bf = w_qkv.astype(jnp.bfloat16)
    w_proj_bf = w_proj.astype(jnp.bfloat16)

    # Attention tile: 256 for 256-aligned sequences (fills v6e/v7x MXU),
    # 128 with padding otherwise; tiny sequences use the whole sequence.
    if T % 256 == 0:
        tile = 256
    elif T >= 128:
        tile = 128
    else:
        tile = T
    T_pad = _round_up(T, tile)
    if T_pad != T:
        # Causal mask excludes padded KV columns for every real query row;
        # padded query rows are sliced off at the end.
        x_bf = jnp.pad(x_bf, ((0, 0), (0, T_pad - T), (0, 0)))

    row_tile = _pick_tile(T_pad, (256, 128))

    # Fused QKV projection; emits bf16 so attention DMAs bf16 q/k/v directly.
    qkv = _linear(x_bf, w_qkv_bf, b_qkv, out_dtype=jnp.bfloat16,
                  row_tile=row_tile)                        # (B, T_pad, 3C)

    # Head split (XLA layout plumbing; attention blocks stay lane-dense).
    # TODO(synk): fuse the head split/merge into the projection kernels'
    # BlockSpecs to remove these HBM transpose passes for large models.
    qkv = qkv.reshape(B, T_pad, 3, n_head, hd)
    q = jnp.transpose(qkv[:, :, 0], (0, 2, 1, 3))           # (B, H, T_pad, hd)
    k = jnp.transpose(qkv[:, :, 1], (0, 2, 1, 3))
    v = jnp.transpose(qkv[:, :, 2], (0, 2, 1, 3))

    y = _flash_attention(q, k, v, tile=tile)                # (B, H, T_pad, hd) bf16
    y = jnp.transpose(y, (0, 2, 1, 3)).reshape(B, T_pad, C)

    # TODO(synk): attn/resid dropout omitted (p = 0.0, eval mode -> identity).
    out = _linear(y, w_proj_bf, b_proj, out_dtype=in_dtype, row_tile=row_tile)
    return out[:, :T]


# ---------------------------------------------------------------------------
# Pure-JAX reference (matches the PyTorch module forward with dropout=0).
# ---------------------------------------------------------------------------
def _reference(x, w_qkv, b_qkv, w_proj, b_proj, n_head):
    B, T, C = x.shape
    hd = C // n_head
    qkv = jnp.einsum("btc,cd->btd", x, w_qkv) + b_qkv
    q, k, v = jnp.split(qkv, 3, axis=-1)
    q = q.reshape(B, T, n_head, hd).transpose(0, 2, 1, 3)
    k = k.reshape(B, T, n_head, hd).transpose(0, 2, 1, 3)
    v = v.reshape(B, T, n_head, hd).transpose(0, 2, 1, 3)
    att = jnp.einsum("bhqd,bhkd->bhqk", q, k) / math.sqrt(hd)
    mask = jnp.tril(jnp.ones((T, T), dtype=bool))
    att = jnp.where(mask[None, None], att, -jnp.inf)
    att = jax.nn.softmax(att, axis=-1)
    y = jnp.einsum("bhqk,bhkd->bhqd", att, v)
    y = y.transpose(0, 2, 1, 3).reshape(B, T, C)
    return jnp.einsum("btc,cd->btd", y, w_proj) + b_proj


if __name__ == "__main__":
    # Config: n_embd=32, n_head=4, bias=True, dropout=0.0 (eval)
    B, T, C, n_head = 2, 8, 32, 4

    key = jax.random.PRNGKey(0)
    kx, k1, k2, k3, k4 = jax.random.split(key, 5)
    x = jax.random.normal(kx, (B, T, C), dtype=jnp.float32)
    w_qkv = jax.random.normal(k1, (C, 3 * C), dtype=jnp.float32) * 0.02
    b_qkv = jax.random.normal(k2, (3 * C,), dtype=jnp.float32) * 0.02
    w_proj = jax.random.normal(k3, (C, C), dtype=jnp.float32) * 0.02
    b_proj = jax.random.normal(k4, (C,), dtype=jnp.float32) * 0.02

    fwd = jax.jit(functools.partial(causal_self_attention, n_head=n_head))
    y = fwd(x, w_qkv, b_qkv, w_proj, b_proj)
    y = jax.block_until_ready(y)

    y_ref = _reference(x, w_qkv, b_qkv, w_proj, b_proj, n_head)
    assert jnp.allclose(y, y_ref, atol=2e-2, rtol=2e-2), "mismatch vs reference"

    print("KERNEL_OK")
</pallas_src>

<mosaic_0001>
module attributes {stable_mosaic.version = 11 : i64} {
  func.func @_linear_kernel(%arg0: i32, %arg1: i32, %arg2: i32, %arg3: memref<1x8x32xbf16, #tpu.memory_space<vmem>>, %arg4: memref<32x96xbf16, #tpu.memory_space<vmem>>, %arg5: memref<1x96xf32, #tpu.memory_space<vmem>>, %arg6: memref<1x8x96xbf16, #tpu.memory_space<vmem>>) attributes {dimension_semantics = [#tpu.dimension_semantics<parallel>, #tpu.dimension_semantics<parallel>, #tpu.dimension_semantics<parallel>], iteration_bounds = array<i64: 2, 1, 1>, scalar_prefetch = 0 : i64, scratch_operands = 0 : i64, tpu.core_type = #tpu.core_type<tc>, window_params = [{transform_indices = @transform_0, window_bounds = array<i64: 1, 8, 32>}, {transform_indices = @transform_1, window_bounds = array<i64: 32, 96>}, {transform_indices = @transform_2, window_bounds = array<i64: 1, 96>}, {transform_indices = @transform_3, window_bounds = array<i64: 1, 8, 96>}]} {
    %c0 = arith.constant 0 : index
    %c0_0 = arith.constant 0 : index
    %c0_1 = arith.constant 0 : index
    %0 = vector.load %arg3[%c0, %c0_0, %c0_1] : memref<1x8x32xbf16, #tpu.memory_space<vmem>>, vector<1x8x32xbf16>
    %1 = vector.shape_cast %0 : vector<1x8x32xbf16> to vector<8x32xbf16>
    %c0_2 = arith.constant 0 : index
    %c0_3 = arith.constant 0 : index
    %2 = vector.load %arg4[%c0_2, %c0_3] : memref<32x96xbf16, #tpu.memory_space<vmem>>, vector<32x96xbf16>
    %cst = arith.constant dense<0.000000e+00> : vector<8x96xf32>
    %3 = tpu.matmul %1, %2, %cst {dimension_numbers = #tpu.dot_dimension_numbers<[1], [0], [0], [1], [0, 0, 1, 1], [], []>} : vector<8x32xbf16>, vector<32x96xbf16>, vector<8x96xf32> -> vector<8x96xf32>
    %c0_4 = arith.constant 0 : index
    %c0_5 = arith.constant 0 : index
    %4 = vector.load %arg5[%c0_4, %c0_5] : memref<1x96xf32, #tpu.memory_space<vmem>>, vector<1x96xf32>
    %5 = vector.broadcast %4 : vector<1x96xf32> to vector<8x96xf32>
    %6 = arith.addf %3, %5 : vector<8x96xf32>
    %7 = arith.truncf %6 : vector<8x96xf32> to vector<8x96xbf16>
    %c0_6 = arith.constant 0 : index
    %c0_7 = arith.constant 0 : index
    %c0_8 = arith.constant 0 : index
    %8 = vector.load %arg6[%c0_6, %c0_7, %c0_8] : memref<1x8x96xbf16, #tpu.memory_space<vmem>>, vector<1x8x96xbf16>
    %9 = vector.shape_cast %8 : vector<1x8x96xbf16> to vector<8x96xbf16>
    %10 = vector.shape_cast %7 : vector<8x96xbf16> to vector<1x8x96xbf16>
    tpu.vector_store %arg6[%c0_6, %c0_7, %c0_8], %10 {strides = array<i32>} : memref<1x8x96xbf16, #tpu.memory_space<vmem>>, vector<1x8x96xbf16>,
    return
  }
  func.func @transform_0(%arg0: i32, %arg1: i32, %arg2: i32) -> (i32, i32, i32) {
    %c0_i32 = arith.constant 0 : i32
    %c0_i32_0 = arith.constant 0 : i32
    return %arg0, %arg1, %c0_i32 : i32, i32, i32
  }
  func.func @transform_1(%arg0: i32, %arg1: i32, %arg2: i32) -> (i32, i32) {
    %c0_i32 = arith.constant 0 : i32
    %c0_i32_0 = arith.constant 0 : i32
    return %c0_i32, %arg2 : i32, i32
  }
  func.func @transform_2(%arg0: i32, %arg1: i32, %arg2: i32) -> (i32, i32) {
    %c0_i32 = arith.constant 0 : i32
    %c0_i32_0 = arith.constant 0 : i32
    return %c0_i32, %arg2 : i32, i32
  }
  func.func @transform_3(%arg0: i32, %arg1: i32, %arg2: i32) -> (i32, i32, i32) {
    %c0_i32 = arith.constant 0 : i32
    return %arg0, %arg1, %arg2 : i32, i32, i32
  }
}

module attributes {stable_mosaic.version = 11 : i64} {
  func.func @_linear_kernel(%arg0: i32, %arg1: i32, %arg2: i32, %arg3: memref<1x8x32xbf16, #tpu.memory_space<vmem>>, %arg4: memref<32x32xbf16, #tpu.memory_space<vmem>>, %arg5: memref<1x32xf32, #tpu.memory_space<vmem>>, %arg6: memref<1x8x32xf32, #tpu.memory_space<vmem>>) attributes {dimension_semantics = [#tpu.dimension_semantics<parallel>, #tpu.dimension_semantics<parallel>, #tpu.dimension_semantics<parallel>], iteration_bounds = array<i64: 2, 1, 1>, scalar_prefetch = 0 : i64, scratch_operands = 0 : i64, tpu.core_type = #tpu.core_type<tc>, window_params = [{transform_indices = @transform_0, window_bounds = array<i64: 1, 8, 32>}, {transform_indices = @transform_1, window_bounds = array<i64: 32, 32>}, {transform_indices = @transform_2, window_bounds = array<i64: 1, 32>}, {transform_indices = @transform_3, window_bounds = array<i64: 1, 8, 32>}]} {
    %c0 = arith.constant 0 : index
    %c0_0 = arith.constant 0 : index
    %c0_1 = arith.constant 0 : index
    %0 = vector.load %arg3[%c0, %c0_0, %c0_1] : memref<1x8x32xbf16, #tpu.memory_space<vmem>>, vector<1x8x32xbf16>
    %1 = vector.shape_cast %0 : vector<1x8x32xbf16> to vector<8x32xbf16>
    %c0_2 = arith.constant 0 : index
    %c0_3 = arith.constant 0 : index
    %2 = vector.load %arg4[%c0_2, %c0_3] : memref<32x32xbf16, #tpu.memory_space<vmem>>, vector<32x32xbf16>
    %cst = arith.constant dense<0.000000e+00> : vector<8x32xf32>
    %3 = tpu.matmul %1, %2, %cst {dimension_numbers = #tpu.dot_dimension_numbers<[1], [0], [0], [1], [0, 0, 1, 1], [], []>} : vector<8x32xbf16>, vector<32x32xbf16>, vector<8x32xf32> -> vector<8x32xf32>
    %c0_4 = arith.constant 0 : index
    %c0_5 = arith.constant 0 : index
    %4 = vector.load %arg5[%c0_4, %c0_5] : memref<1x32xf32, #tpu.memory_space<vmem>>, vector<1x32xf32>
    %5 = vector.broadcast %4 : vector<1x32xf32> to vector<8x32xf32>
    %6 = arith.addf %3, %5 : vector<8x32xf32>
    %c0_6 = arith.constant 0 : index
    %c0_7 = arith.constant 0 : index
    %c0_8 = arith.constant 0 : index
    %7 = vector.load %arg6[%c0_6, %c0_7, %c0_8] : memref<1x8x32xf32, #tpu.memory_space<vmem>>, vector<1x8x32xf32>
    %8 = vector.shape_cast %7 : vector<1x8x32xf32> to vector<8x32xf32>
    %9 = vector.shape_cast %6 : vector<8x32xf32> to vector<1x8x32xf32>
    tpu.vector_store %arg6[%c0_6, %c0_7, %c0_8], %9 {strides = array<i32>} : memref<1x8x32xf32, #tpu.memory_space<vmem>>, vector<1x8x32xf32>,
    return
  }
  func.func @transform_0(%arg0: i32, %arg1: i32, %arg2: i32) -> (i32, i32, i32) {
    %c0_i32 = arith.constant 0 : i32
    %c0_i32_0 = arith.constant 0 : i32
    return %arg0, %arg1, %c0_i32 : i32, i32, i32
  }
  func.func @transform_1(%arg0: i32, %arg1: i32, %arg2: i32) -> (i32, i32) {
    %c0_i32 = arith.constant 0 : i32
    %c0_i32_0 = arith.constant 0 : i32
    return %c0_i32, %arg2 : i32, i32
  }
  func.func @transform_2(%arg0: i32, %arg1: i32, %arg2: i32) -> (i32, i32) {
    %c0_i32 = arith.constant 0 : i32
    %c0_i32_0 = arith.constant 0 : i32
    return %c0_i32, %arg2 : i32, i32
  }
  func.func @transform_3(%arg0: i32, %arg1: i32, %arg2: i32) -> (i32, i32, i32) {
    %c0_i32 = arith.constant 0 : i32
    return %arg0, %arg1, %arg2 : i32, i32, i32
  }
}

module attributes {stable_mosaic.version = 11 : i64} {
  func.func @_flash_attn_kernel(%arg0: i32, %arg1: i32, %arg2: i32, %arg3: memref<1xi32, #tpu.memory_space<smem>>, %arg4: memref<1xi32, #tpu.memory_space<smem>>, %arg5: memref<1x1x8x8xbf16, #tpu.memory_space<vmem>>, %arg6: memref<1x1x8x8xbf16, #tpu.memory_space<vmem>>, %arg7: memref<1x1x8x8xbf16, #tpu.memory_space<vmem>>, %arg8: memref<1x1x8x8xbf16, #tpu.memory_space<vmem>>, %arg9: memref<8x1xf32, #tpu.memory_space<vmem>>, %arg10: memref<8x1xf32, #tpu.memory_space<vmem>>, %arg11: memref<8x8xf32, #tpu.memory_space<vmem>>) attributes {dimension_semantics = [#tpu.dimension_semantics<parallel>, #tpu.dimension_semantics<parallel>, #tpu.dimension_semantics<arbitrary>], iteration_bounds = array<i64: 2, 4, 1>, scalar_prefetch = 2 : i64, scratch_operands = 3 : i64, tpu.core_type = #tpu.core_type<tc>, window_params = [{transform_indices = @transform_0, window_bounds = array<i64: 1, 1, 8, 8>}, {transform_indices = @transform_1, window_bounds = array<i64: 1, 1, 8, 8>}, {transform_indices = @transform_2, window_bounds = array<i64: 1, 1, 8, 8>}, {transform_indices = @transform_3, window_bounds = array<i64: 1, 1, 8, 8>}]} {
    %0 = arith.index_cast %arg2 : i32 to index
    %1 = memref.load %arg3[%0] : memref<1xi32, #tpu.memory_space<smem>>
    %2 = arith.index_cast %arg2 : i32 to index
    %3 = memref.load %arg4[%2] : memref<1xi32, #tpu.memory_space<smem>>
    %c0_i32 = arith.constant 0 : i32
    %4 = arith.cmpi eq, %3, %c0_i32 : i32
    %5 = arith.extui %4 : i1 to i32
    %c0_i32_0 = arith.constant 0 : i32
    %6 = arith.cmpi ne, %5, %c0_i32_0 : i32
    scf.if %6 {
      %cst_30 = arith.constant -1.000000e+30 : f32
      %51 = vector.broadcast %cst_30 : f32 to vector<8x1xf32>
      %c0_31 = arith.constant 0 : index
      %c0_32 = arith.constant 0 : index
      %52 = vector.load %arg9[%c0_31, %c0_32] : memref<8x1xf32, #tpu.memory_space<vmem>>, vector<8x1xf32>
      tpu.vector_store %arg9[%c0_31, %c0_32], %51 {strides = array<i32>} : memref<8x1xf32, #tpu.memory_space<vmem>>, vector<8x1xf32>,
      %cst_33 = arith.constant 0.000000e+00 : f32
      %53 = vector.broadcast %cst_33 : f32 to vector<8x1xf32>
      %c0_34 = arith.constant 0 : index
      %c0_35 = arith.constant 0 : index
      %54 = vector.load %arg10[%c0_34, %c0_35] : memref<8x1xf32, #tpu.memory_space<vmem>>, vector<8x1xf32>
      tpu.vector_store %arg10[%c0_34, %c0_35], %53 {strides = array<i32>} : memref<8x1xf32, #tpu.memory_space<vmem>>, vector<8x1xf32>,
      %cst_36 = arith.constant 0.000000e+00 : f32
      %55 = vector.broadcast %cst_36 : f32 to vector<8x8xf32>
      %c0_37 = arith.constant 0 : index
      %c0_38 = arith.constant 0 : index
      %56 = vector.load %arg11[%c0_37, %c0_38] : memref<8x8xf32, #tpu.memory_space<vmem>>, vector<8x8xf32>
      tpu.vector_store %arg11[%c0_37, %c0_38], %55 {strides = array<i32>} : memref<8x8xf32, #tpu.memory_space<vmem>>, vector<8x8xf32>,
    } else {
    }
    %c0 = arith.constant 0 : index
    %c0_1 = arith.constant 0 : index
    %c0_2 = arith.constant 0 : index
    %c0_3 = arith.constant 0 : index
    %7 = vector.load %arg5[%c0, %c0_1, %c0_2, %c0_3] : memref<1x1x8x8xbf16, #tpu.memory_space<vmem>>, vector<1x1x8x8xbf16>
    %8 = vector.shape_cast %7 : vector<1x1x8x8xbf16> to vector<8x8xbf16>
    %c0_4 = arith.constant 0 : index
    %c0_5 = arith.constant 0 : index
    %c0_6 = arith.constant 0 : index
    %c0_7 = arith.constant 0 : index
    %9 = vector.load %arg6[%c0_4, %c0_5, %c0_6, %c0_7] : memref<1x1x8x8xbf16, #tpu.memory_space<vmem>>, vector<1x1x8x8xbf16>
    %10 = vector.shape_cast %9 : vector<1x1x8x8xbf16> to vector<8x8xbf16>
    %c0_8 = arith.constant 0 : index
    %c0_9 = arith.constant 0 : index
    %c0_10 = arith.constant 0 : index
    %c0_11 = arith.constant 0 : index
    %11 = vector.load %arg7[%c0_8, %c0_9, %c0_10, %c0_11] : memref<1x1x8x8xbf16, #tpu.memory_space<vmem>>, vector<1x1x8x8xbf16>
    %12 = vector.shape_cast %11 : vector<1x1x8x8xbf16> to vector<8x8xbf16>
    %cst = arith.constant dense<0.000000e+00> : vector<8x8xf32>
    %13 = tpu.matmul %8, %10, %cst {dimension_numbers = #tpu.dot_dimension_numbers<[1], [1], [0], [0], [0, 0, 1, 0], [], []>} : vector<8x8xbf16>, vector<8x8xbf16>, vector<8x8xf32> -> vector<8x8xf32>
    %14 = tpu.iota {dimensions = array<i32: 0>} : vector<8x8xi32>
    %c8_i32 = arith.constant 8 : i32
    %15 = arith.muli %1, %c8_i32 : i32
    %16 = vector.broadcast %15 : i32 to vector<8x8xi32>
    %17 = arith.addi %14, %16 : vector<8x8xi32>
    %18 = tpu.iota {dimensions = array<i32: 1>} : vector<8x8xi32>
    %c8_i32_12 = arith.constant 8 : i32
    %19 = arith.muli %3, %c8_i32_12 : i32
    %20 = vector.broadcast %19 : i32 to vector<8x8xi32>
    %21 = arith.addi %18, %20 : vector<8x8xi32>
    %22 = arith.cmpi sle, %21, %17 : vector<8x8xi32>
    %cst_13 = arith.constant -1.000000e+30 : f32
    %23 = vector.broadcast %cst_13 : f32 to vector<8x8xf32>
    %24 = arith.select %22, %13, %23 : vector<8x8xi1>, vector<8x8xf32>
    %c0_14 = arith.constant 0 : index
    %c0_15 = arith.constant 0 : index
    %25 = vector.load %arg9[%c0_14, %c0_15] : memref<8x1xf32, #tpu.memory_space<vmem>>, vector<8x1xf32>
    %cst_16 = arith.constant dense<0xFF800000> : vector<8xf32>
    %26 = vector.multi_reduction <maximumf>, %24, %cst_16 [1] : vector<8x8xf32> to vector<8xf32>
    %27 = vector.shape_cast %26 : vector<8xf32> to vector<8x1xf32>
    %28 = arith.maximumf %25, %27 : vector<8x1xf32>
    %29 = arith.subf %25, %28 : vector<8x1xf32>
    %30 = math.exp %29 : vector<8x1xf32>
    %31 = vector.broadcast %28 : vector<8x1xf32> to vector<8x8xf32>
    %32 = arith.subf %24, %31 : vector<8x8xf32>
    %33 = math.exp %32 : vector<8x8xf32>
    %c0_17 = arith.constant 0 : index
    %c0_18 = arith.constant 0 : index
    %34 = vector.load %arg10[%c0_17, %c0_18] : memref<8x1xf32, #tpu.memory_space<vmem>>, vector<8x1xf32>
    %35 = arith.mulf %30, %34 : vector<8x1xf32>
    %cst_19 = arith.constant dense<0.000000e+00> : vector<8xf32>
    %36 = vector.multi_reduction <add>, %33, %cst_19 [1] : vector<8x8xf32> to vector<8xf32>
    %37 = vector.shape_cast %36 : vector<8xf32> to vector<8x1xf32>
    %38 = arith.addf %35, %37 : vector<8x1xf32>
    %c0_20 = arith.constant 0 : index
    %c0_21 = arith.constant 0 : index
    %39 = vector.load %arg10[%c0_20, %c0_21] : memref<8x1xf32, #tpu.memory_space<vmem>>, vector<8x1xf32>
    tpu.vector_store %arg10[%c0_20, %c0_21], %38 {strides = array<i32>} : memref<8x1xf32, #tpu.memory_space<vmem>>, vector<8x1xf32>,
    %c0_22 = arith.constant 0 : index
    %c0_23 = arith.constant 0 : index
    %40 = vector.load %arg11[%c0_22, %c0_23] : memref<8x8xf32, #tpu.memory_space<vmem>>, vector<8x8xf32>
    %41 = vector.broadcast %30 : vector<8x1xf32> to vector<8x8xf32>
    %42 = arith.mulf %41, %40 : vector<8x8xf32>
    %43 = arith.truncf %33 : vector<8x8xf32> to vector<8x8xbf16>
    %cst_24 = arith.constant dense<0.000000e+00> : vector<8x8xf32>
    %44 = tpu.matmul %43, %12, %cst_24 {dimension_numbers = #tpu.dot_dimension_numbers<[1], [0], [0], [1], [0, 0, 1, 1], [], []>} : vector<8x8xbf16>, vector<8x8xbf16>, vector<8x8xf32> -> vector<8x8xf32>
    %45 = arith.addf %42, %44 : vector<8x8xf32>
    %c0_25 = arith.constant 0 : index
    %c0_26 = arith.constant 0 : index
    %46 = vector.load %arg11[%c0_25, %c0_26] : memref<8x8xf32, #tpu.memory_space<vmem>>, vector<8x8xf32>
    tpu.vector_store %arg11[%c0_25, %c0_26], %45 {strides = array<i32>} : memref<8x8xf32, #tpu.memory_space<vmem>>, vector<8x8xf32>,
    %c0_27 = arith.constant 0 : index
    %c0_28 = arith.constant 0 : index
    %47 = vector.load %arg9[%c0_27, %c0_28] : memref<8x1xf32, #tpu.memory_space<vmem>>, vector<8x1xf32>
    tpu.vector_store %arg9[%c0_27, %c0_28], %28 {strides = array<i32>} : memref<8x1xf32, #tpu.memory_space<vmem>>, vector<8x1xf32>,
    %48 = arith.cmpi eq, %3, %1 : i32
    %49 = arith.extui %48 : i1 to i32
    %c0_i32_29 = arith.constant 0 : i32
    %50 = arith.cmpi ne, %49, %c0_i32_29 : i32
    scf.if %50 {
      %c0_30 = arith.constant 0 : index
      %c0_31 = arith.constant 0 : index
      %51 = vector.load %arg10[%c0_30, %c0_31] : memref<8x1xf32, #tpu.memory_space<vmem>>, vector<8x1xf32>
      %52 = tpu.reciprocal %51 {approx = true} : vector<8x1xf32> -> vector<8x1xf32>
      %c0_32 = arith.constant 0 : index
      %c0_33 = arith.constant 0 : index
      %53 = vector.load %arg11[%c0_32, %c0_33] : memref<8x8xf32, #tpu.memory_space<vmem>>, vector<8x8xf32>
      %54 = vector.broadcast %52 : vector<8x1xf32> to vector<8x8xf32>
      %55 = arith.mulf %53, %54 : vector<8x8xf32>
      %56 = arith.truncf %55 : vector<8x8xf32> to vector<8x8xbf16>
      %c0_34 = arith.constant 0 : index
      %c0_35 = arith.constant 0 : index
      %c0_36 = arith.constant 0 : index
      %c0_37 = arith.constant 0 : index
      %57 = vector.load %arg8[%c0_34, %c0_35, %c0_36, %c0_37] : memref<1x1x8x8xbf16, #tpu.memory_space<vmem>>, vector<1x1x8x8xbf16>
      %58 = vector.shape_cast %57 : vector<1x1x8x8xbf16> to vector<8x8xbf16>
      %59 = vector.shape_cast %56 : vector<8x8xbf16> to vector<1x1x8x8xbf16>
      tpu.vector_store %arg8[%c0_34, %c0_35, %c0_36, %c0_37], %59 {strides = array<i32>} : memref<1x1x8x8xbf16, #tpu.memory_space<vmem>>, vector<1x1x8x8xbf16>,
    } else {
    }
    return
  }
  func.func @transform_0(%arg0: i32, %arg1: i32, %arg2: i32, %arg3: memref<1xi32, #tpu.memory_space<smem>>, %arg4: memref<1xi32, #tpu.memory_space<smem>>) -> (i32, i32, i32, i32) {
    %0 = arith.index_cast %arg2 : i32 to index
    %1 = memref.load %arg3[%0] : memref<1xi32, #tpu.memory_space<smem>>
    %c0_i32 = arith.constant 0 : i32
    %c0_i32_0 = arith.constant 0 : i32
    return %arg0, %arg1, %1, %c0_i32 : i32, i32, i32, i32
  }
  func.func @transform_1(%arg0: i32, %arg1: i32, %arg2: i32, %arg3: memref<1xi32, #tpu.memory_space<smem>>, %arg4: memref<1xi32, #tpu.memory_space<smem>>) -> (i32, i32, i32, i32) {
    %0 = arith.index_cast %arg2 : i32 to index
    %1 = memref.load %arg4[%0] : memref<1xi32, #tpu.memory_space<smem>>
    %c0_i32 = arith.constant 0 : i32
    %c0_i32_0 = arith.constant 0 : i32
    return %arg0, %arg1, %1, %c0_i32 : i32, i32, i32, i32
  }
  func.func @transform_2(%arg0: i32, %arg1: i32, %arg2: i32, %arg3: memref<1xi32, #tpu.memory_space<smem>>, %arg4: memref<1xi32, #tpu.memory_space<smem>>) -> (i32, i32, i32, i32) {
    %0 = arith.index_cast %arg2 : i32 to index
    %1 = memref.load %arg4[%0] : memref<1xi32, #tpu.memory_space<smem>>
    %c0_i32 = arith.constant 0 : i32
    %c0_i32_0 = arith.constant 0 : i32
    return %arg0, %arg1, %1, %c0_i32 : i32, i32, i32, i32
  }
  func.func @transform_3(%arg0: i32, %arg1: i32, %arg2: i32, %arg3: memref<1xi32, #tpu.memory_space<smem>>, %arg4: memref<1xi32, #tpu.memory_space<smem>>) -> (i32, i32, i32, i32) {
    %0 = arith.index_cast %arg2 : i32 to index
    %1 = memref.load %arg3[%0] : memref<1xi32, #tpu.memory_space<smem>>
    %c0_i32 = arith.constant 0 : i32
    %c0_i32_0 = arith.constant 0 : i32
    return %arg0, %arg1, %1, %c0_i32 : i32, i32, i32, i32
  }
}

</mosaic_0001>

<bundles_post_ra>
// kernel: causal_self_attention.5
= control target key start
LH: loop header
LB: loop body
LE: loop exit
PB: predicated region body
PF: predicated region fallthrough
CT: control target
= control target key end

     0   :  { %8 = vsyncpa [#allocation3], 0  ;;  %s727_s0 = inlined_call_operand.vmem [shape: bf16[2,8,32], index: 0, kind: input, shape index: {}]   ;;  %s728_s1 = inlined_call_operand.vmem [shape: bf16[32,32], index: 1, kind: input, shape index: {}]   ;;  %s729_s2 = inlined_call_operand.vmem [shape: f32[1,32], index: 2, kind: input, shape index: {}]   ;;  %s730_s3 = inlined_call_operand.hbm [shape: f32[2,8,32], index: 3, kind: output, shape index: {}]  }
   0x1   :  { %10 = vsyncpa [#allocation3 + $0x1], 0  ;;  %s607_s12 = smov 0   ;;  %s609_s13 = smov 0  }
   0x2   :  { %s611_s14 = smov 0   ;;  %s613_s15 = smov 0  }
   0x3   :  { %s615_s16 = smov 0   ;;  %s617_s17 = smov 0  }
   0x4 LB: > { %s419_s18 = sadd.s32 4294967295, %s582_s17   ;;  %s420_s19 = sadd.s32 4294967294, %s582_s17   ;;  %s582_s17 = sphi %s617_s17, %s16_s17   ;;  %s578_s16 = sphi %s615_s16, %s737_s16   ;;  %s574_s15 = sphi %s613_s15, %s736_s15   ;;  %s570_s14 = sphi %s611_s14, %s735_s14   ;;  %s566_s13 = sphi %s609_s13, %s734_s13   ;;  %s562_s12 = sphi %s607_s12, %s733_s12  }
   0x5   : > { %s35_s20 = sadd.s32 1, %s578_s16  ;;  %s126_s21 = sadd.s32 1, %s570_s14 }
   0x6   : > { %p37_p0 = scmp.ge.s32.totalorder %s35_s20, 2  ;;  %p136_p1 = scmp.ne.s32.totalorder %s570_s14, %s566_s13 }
   0x7   : > { %p137_p2 = scmp.eq.s32.totalorder %s419_s18, 1  ;;  %p142_p3 = scmp.ne.s32.totalorder %s566_s13, %s562_s12 }
   0x8   : > { %s739_s20 = smov (%p37_p0, %s35_s20), 0  ;;  %p143_p5 = scmp.eq.s32.totalorder %s420_s19, 1 }
   0x9   : > { %p647_p4 = por %p137_p2, %p136_p1  ;;  %s119_s23 = ssub.s32 %s578_s16, %s739_s20 }
   0xa   : > { %p425_p6 = scmp.ge.s32.totalorder %s582_s17, 1  ;;  %p124_p7 = scmp.eq.s32.totalorder %s119_s23, 0 }
   0xb   : > { %p654_p8 = por %p143_p5, %p142_p3  ;;  %p184_p9 = scmp.lt.s32.totalorder %s582_s17, 3 }
   0xc   : > { %s660_s25 = scalar_select %p124_p7, %s570_s14, %s126_s21  }
   0xd   : > { %p185_p10 = pnand %p425_p6, %p184_p9 }
   0xe   : > { %p217_p11 = scmp.lt.s32.totalorder (!%p185_p10), %s574_s15, 1  ;;  %s214_s8 = sand.u32 (!%p185_p10), 1, %s566_s13  }
   0xf   : > { %188 = sbr.rel (%p185_p10) target bundleno = 238 (0xee), region = 32  ;;  %s426_s9 = sshll.u32 (!%p185_p10), %s214_s8, 3 }
  0x10   : > { %s433_s18 = sshll.u32 (!%p185_p10), %s574_s15, 7  ;;  %s216_s19 = scalar_lea.vmem (!%p185_p10), [#allocation2], %s426_s9 }
  0x11   : > { %s317_s21 = sshll.u32 (!%p185_p10), %s216_s19, 4  ;;  %s681_s27 = scalar_lea.hbm (!%p185_p10), %s730_s3, %s433_s18  ;;  %s683_s21 = int_to_ptr.vmem [resolvable:$true] %s317_s21 }
  0x12   : > { %s302_s28 = scalar_lea.sflag (!%p185_p10), [#allocation3], %s214_s8  ;;  %s506_s29 = scalar_lea.vmem (!%p185_p10), %s683_s21, 128 }
  0x13   : > { %p507_p12 = scmp.ne.s32.totalorder (!%p185_p10), %s683_s21, %s506_s29 }
  0x14   : > { %v504_v0 = vld [vmem:[%s728_s1 + $0x8] sm:$0xff]   ;;  %v584_v1 = vmov 0.0   ;;  %v505_v2 = vld [vmem:[%s728_s1] sm:$0xff]   ;;  %vm585_vm0 = vmmov 0   ;;  %s218_s30 = scalar_select %p217_p11, %s574_s15, 1  ;;  %vm256_vm1 = vcmask 261120  }
  0x15   : > { %439 = vmatprep.subr.bf16.mxu0 %v584_v1  ;;  %443 = vmatprep.mubr.msk.bf16.mxu0 %vm585_vm0, %v584_v1  ;;  %v428_v4 = vld [vmem:[%s729_s2] ss:$0 sm:$0xff]  ;;  %p508_p13 = pnand %p507_p12, %p647_p4  ;;  %s586_s15 = smov [#allocation2]  }
  0x16   : > { %440 = vmatpush3.bf16.msra.mxu0 %v504_v0  ;;  %s427_s4 = sshll.u32 %s218_s30, 2  ;;  %s510_s30 = sshll.u32 %s586_s15, 4  ;;  %s511_s30 = int_to_ptr.vmem [resolvable:$false] %s510_s30 }
  0x17   : > { %441 = vmatprep.subr.bf16.mxu0 %v584_v1  ;;  %s223_s7 = scalar_lea.vmem %s727_s0, %s427_s4  ;;  %p509_p0 = pneg %p508_p13 }
  0x18   : > { %v232_v3 = vld [vmem:[%s223_s7] sm:$0xf]  ;;  %s512_s4 = scalar_lea.vmem %s511_s30, 256  ;;  %p513_p1 = scmp.lt.s32.totalorder %s683_s21, %s511_s30 }
  0x19   : > { %p514_p2 = scmp.lt.s32.totalorder %s512_s4, %s506_s29 }
  0x1a   : > { %442 = vmatpush3.bf16.msra.mxu0 %v505_v2 }
  0x1b   : > { %p515_p3 = por %p514_p2, %p513_p1 }
  0x1d   : > { %444 = vmatmul.mubr.msk.bf16.vlgmr.msra.gmra.mxu0 %vm256_vm1, %v232_v3  ;;  %p516_p5 = pnand %p515_p3, %p509_p0 }
  0xdd   : > { %v294_v5 = vpop.f32.mrf.mxu0 }
  0xde   : > { %v295_v6 = vadd.f32 %v428_v4, %v294_v5 }
  0xdf   : > { %v445_v7 = vpop.f32.mrf.mxu0 }
  0xe0   : > { %300 = vst.msk [vmem:[%s216_s19] sm:$0xff] %vm256_vm1, %v295_v6 }
  0xe1   : > { %v297_v8 = vpop.f32.mrf.mxu0 }
  0xe2   : > { %519 = shalt.err (!%p516_p5)
}
  0xe3   : > { %s520_s5 = scalar_lea.hbm %s681_s27, 128  ;;  %s524_s8 = scalar_lea.hbm %s730_s3, 256 }
  0xe4   : > { %p521_p6 = scmp.ne.s32.totalorder %s681_s27, %s520_s5  ;;  %p525_p10 = scmp.lt.s32.totalorder %s681_s27, %s730_s3 }
  0xe5   : > { %p526_p11 = scmp.lt.s32.totalorder %s524_s8, %s520_s5 }
  0xe6   : > { %p522_p7 = pnand %p521_p6, %p647_p4 }
  0xe7   : > { %p527_p12 = por %p526_p11, %p525_p10 }
  0xe8   : > { %p523_p9 = pneg %p522_p7 }
  0xea   : > { %p528_p13 = pnand %p527_p12, %p523_p9 }
  0xec   : > { %531 = shalt.err (!%p528_p13)
}
  0xed   : > { %447 = dma.vmem_to_hbm [thread:$0]  (%p647_p4), %s683_s21, 128, %s681_s27, %s302_s28   ;;  %v446_v9 = vpop.f32.mrf.mxu0 }
  0xee PF: > { %p453_p0 = scmp.ge.s32.totalorder %s582_s17, 2  ;;  %s329_s11 = sand.u32 1, %s562_s12  }
  0xef   : > { %s330_s18 = scalar_lea.sflag [#allocation3], %s329_s11 }
  0xf0   : > { %p450_p1 = pnand %p453_p0, %p654_p8 }
  0xf2   : > { %p451_p2 = pneg %p450_p1 }
  0xf4   : > { %557 = dma.done.wait (%p451_p2), %s330_s18, 128  }
  0xf5   : > { %559 = vsyncadd (%p451_p2), %s330_s18, 4294967168  ;;  %s16_s17 = sadd.s32 1, %s582_s17   ;;  %s733_s12 = smov %s566_s13 }
  0xf6   : > { %p13_p3 = scmp.ge.s32.totalorder %s16_s17, 4   ;;  %s734_s13 = smov %s570_s14 }
  0xf7   : > { %s735_s14 = smov %s660_s25  ;;  %s736_s15 = smov %s578_s16 }
  0xf8   : > { %s737_s16 = smov %s739_s20  ;;  %15 = sbr.rel (!%p13_p3) target bundleno = 4 (0x4), region = 73 }
  0xfd   :  { %335 = vsyncpa [#allocation3], 1 }
  0xfe   :  { %337 = vsyncpa [#allocation3 + $0x1], 1 }

// kernel: causal_self_attention.3
= control target key start
LH: loop header
LB: loop body
LE: loop exit
PB: predicated region body
PF: predicated region fallthrough
CT: control target
= control target key end

     0   :  { %s530_s12 = smov 0   ;;  %s532_s13 = smov 0   ;;  %s572_s0 = inlined_call_operand.vmem [shape: bf16[2,8,32], index: 0, kind: input, shape index: {}]   ;;  %s573_s1 = inlined_call_operand.vmem [shape: bf16[32,96], index: 1, kind: input, shape index: {}]   ;;  %s574_s2 = inlined_call_operand.vmem [shape: f32[1,96], index: 2, kind: input, shape index: {}]   ;;  %s575_s3 = inlined_call_operand.vmem [shape: bf16[2,8,96], index: 3, kind: output, shape index: {}]  }
   0x1   :  { %s534_s14 = smov 0  }
   0x2 LB: > { %s32_s15 = sadd.s32 1, %s502_s13  ;;  %p436_p0 = scmp.ge.s32.totalorder %s506_s14, 1  ;;  %s506_s14 = sphi %s534_s14, %s13_s14   ;;  %s502_s13 = sphi %s532_s13, %s577_s13   ;;  %s498_s12 = sphi %s530_s12, %s576_s12  }
   0x3   : > { %p34_p1 = scmp.ge.s32.totalorder %s32_s15, 2  ;;  %p181_p2 = scmp.lt.s32.totalorder %s506_s14, 3 }
   0x5   : > { %s579_s15 = smov (%p34_p1, %s32_s15), 0  ;;  %p182_p3 = pnand %p436_p0, %p181_p2 }
   0x6   : > { %p219_p4 = scmp.lt.s32.totalorder (!%p182_p3), %s498_s12, 1 }
   0x7   : > { %185 = sbr.rel (%p182_p3) target bundleno = 220 (0xdc), region = 32 }
   0xc   : > { %v482_v0 = vld [vmem:[%s573_s1 + $0x8] sm:$0xff]   ;;  %v508_v1 = vmov 0.0   ;;  %v483_v2 = vld [vmem:[%s573_s1] sm:$0xff]   ;;  %vm509_vm0 = vmmov 0   ;;  %s581_s12 = smov (!%p219_p4, %s498_s12), 1  ;;  %vm268_vm1 = vcmask 261120  }
   0xd   : > { %448 = vmatprep.subr.bf16.mxu0 %v508_v1  ;;  %452 = vmatprep.mubr.msk.bf16.mxu0 %vm509_vm0, %v508_v1  ;;  %s437_s20 = sshll.u32 %s581_s12, 2  ;;  %v439_v4 = vld [vmem:[%s574_s2] ss:$0 sm:$0xff]  ;;  %vm313_vm2 = vcmask 781312  }
   0xe   : > { %449 = vmatpush3.bf16.msra.mxu0 %v482_v0  ;;  %s225_s23 = scalar_lea.vmem %s572_s0, %s437_s20  ;;  %s242_s28 = scalar_lea.vmem %s575_s3, %s437_s20 }
   0xf   : > { %450 = vmatprep.subr.bf16.mxu0 %v508_v1  ;;  %v244_v3 = vld [vmem:[%s225_s23] sm:$0xf] }
  0x12   : > { %451 = vmatpush3.bf16.msra.mxu0 %v483_v2 }
  0x15   : > { %453 = vmatmul.mubr.msk.bf16.vlgmr.msra.gmra.mxu0 %vm268_vm1, %v244_v3 }
  0xd5   : > { %v306_v5 = vpop.f32.mrf.mxu0 }
  0xd6   : > { %v307_v6 = vadd.f32 %v439_v4, %v306_v5 }
  0xd7   : > { %v454_v7 = vpop.f32.mrf.mxu0 }
  0xd8   : > { %v312_v8 = vpack.c.bf16 %v307_v6, %v307_v6 }
  0xd9   : > { %v309_v9 = vpop.f32.mrf.mxu0 }
  0xda   : > { %314 = vst.msk [vmem:[%s242_s28] sm:$0xf] %vm313_vm2, %v312_v8 }
  0xdb   : > { %v455_v10 = vpop.f32.mrf.mxu0 }
  0xdc PF: > { %s13_s14 = sadd.s32 1, %s506_s14   ;;  %s576_s12 = smov %s502_s13 }
  0xdd   : > { %p10_p5 = scmp.ge.s32.totalorder %s13_s14, 4   ;;  %s577_s13 = smov %s579_s15 }
  0xdf   :  { %12 = sbr.rel (!%p10_p5) target bundleno = 2 (0x2), region = 68 }

// kernel: causal_self_attention.4
= control target key start
LH: loop header
LB: loop body
LE: loop exit
PB: predicated region body
PF: predicated region fallthrough
CT: control target
= control target key end

     0   :  { %s836_s22 = smov 0   ;;  %s838_s23 = smov 0   ;;  %s920_s0 = inlined_call_operand.<no memory space> [shape: s32[1], index: 0, kind: input, shape index: {}, may-alias: {0,1}]   ;;  %s921_s1 = inlined_call_operand.<no memory space> [shape: s32[1], index: 1, kind: input, shape index: {}, may-alias: {0,1}]   ;;  %s922_s2 = inlined_call_operand.vmem [shape: bf16[2,4,8,8], index: 2, kind: input, shape index: {}]   ;;  %s923_s3 = inlined_call_operand.vmem [shape: bf16[2,4,8,8], index: 3, kind: input, shape index: {}]   ;;  %s924_s4 = inlined_call_operand.vmem [shape: bf16[2,4,8,8], index: 4, kind: input, shape index: {}]   ;;  %s925_s5 = inlined_call_operand.vmem [shape: bf16[2,4,8,8], index: 5, kind: output, shape index: {}]  }
   0x1   :  { %10 = sst [smem:[#allocation6]] %s920_s0  ;;  %s840_s24 = smov 0  }
   0x2   :  { %11 = sst [smem:[#allocation7]] %s921_s1  ;;  %s842_s25 = smov 0  }
   0x3   :  { %s844_s26 = smov 0  }
   0x4 LB: > { %s32_s0 = sadd.s32 1, %s784_s24  ;;  %s36_s1 = sadd.s32 1, %s788_s25  ;;  %s792_s26 = sphi %s844_s26, %s17_s26   ;;  %s788_s25 = sphi %s842_s25, %s929_s25   ;;  %s784_s24 = sphi %s840_s24, %s928_s24   ;;  %s780_s23 = sphi %s838_s23, %s927_s23   ;;  %s776_s22 = sphi %s836_s22, %s926_s22  }
   0x5   : > { %p34_p0 = scmp.ge.s32.totalorder %s32_s0, 4  ;;  %p666_p1 = scmp.ge.s32.totalorder %s792_s26, 1 }
   0x6   : > { %p228_p2 = scmp.lt.s32.totalorder %s792_s26, 9 }
   0x7   : > { %s931_s0 = smov (%p34_p0, %s32_s0), 0  ;;  %s933_s1 = smov (!%p34_p0, %s36_s1), %s788_s25 }
   0x8   : > { %p229_p3 = pnand %p666_p1, %p228_p2  ;;  %p38_p4 = scmp.ge.s32.totalorder %s933_s1, 2 }
   0x9   : > { %s866_s27 = sld [smem:[#allocation6]] (!%p229_p3)  ;;  %p291_p5 = scmp.lt.s32.totalorder (!%p229_p3), %s780_s23, 1 }
   0xa   : > { %s935_s1 = smov (%p38_p4, %s933_s1), 0  ;;  %232 = sbr.rel (%p229_p3) target bundleno = 864 (0x360), region = 32 }
   0xb   : > { %p293_p6 = scmp.lt.s32.totalorder (!%p229_p3), %s776_s22, 3  ;;  %s868_s28 = sld [smem:[#allocation7]] (!%p229_p3) }
   0xf   : > { %s937_s23 = smov (!%p291_p5, %s780_s23), 1  ;;  %s939_s22 = smov (!%p293_p6, %s776_s22), 3 }
  0x10   : > { %p295_p7 = scmp.lt.s32.totalorder %s866_s27, 0  ;;  %s667_s29 = sshll.u32 %s937_s23, 2 }
  0x11   : > { %p308_p8 = scmp.lt.s32.totalorder %s868_s28, 0  ;;  %p675_p9 = scmp.ne.s32.totalorder %s868_s28, 0 }
  0x12   : > { %s296_s30 = scalar_select %p295_p7, %s866_s27, 0 }
  0x13   : > { %s309_s6 = scalar_select %p308_p8, %s868_s28, 0 }
  0x14   : > { %s297_s7 = sadd.s32 %s296_s30, %s939_s22 }
  0x15   : > { %s299_s8 = sadd.s32 %s667_s29, %s297_s7  ;;  %s310_s9 = sadd.s32 %s309_s6, %s939_s22 }
  0x16   : > { %s668_s10 = sshll.u32 %s299_s8, 2  ;;  %s312_s11 = sadd.s32 %s667_s29, %s310_s9 }
  0x17   : > { %s301_s14 = scalar_lea.vmem %s922_s2, %s668_s10  ;;  %s670_s15 = sshll.u32 %s312_s11, 2 }
  0x18   : > { %s314_s18 = scalar_lea.vmem %s923_s3, %s670_s15  ;;  %s883_s21 = scalar_lea.vmem %s924_s4, %s670_s15 }
  0x19   : > { %s888_s22 = scalar_lea.vmem %s925_s5, %s668_s10  ;;  %348 = sbr.rel (%p675_p9) target bundleno = 33 (0x21), region = 36 }
  0x1e   : > { %vm349_vm0 = vcmask 7168   ;;  %vm352_vm1 = vcmask 64512   ;;  %v794_v0 = vmov -1e+30   ;;  %v795_v1 = vmov 0.0  }
  0x1f   : > { %350 = vst.msk [vmem:[#allocation2] sm:$0xff] %vm349_vm0, %v794_v0  ;;  %351 = vst.msk [vmem:[#allocation3] sm:$0xff] %vm349_vm0, %v795_v1 }
  0x20   : > { %353 = vst.msk [vmem:[#allocation4] sm:$0xff] %vm352_vm1, %v795_v1 }
  0x21 PF: > { %v355_v2 = vld [vmem:[%s314_s18] sm:$0xf]  ;;  %vm357_vm2 = vcmask 64512   ;;  %v796_v3 = vmov 0.0   ;;  %vm797_vm3 = vmmov 0   ;;  %v404_v6 = vlaneseq  ;;  %s677_s29 = sshll.u32 %s866_s27, 3  ;;  %p680_p10 = scmp.ne.s32.totalorder %s868_s28, %s866_s27 }
  0x22   : > { %687 = vmatprep.subr.bf16.mxu0 %v796_v3  ;;  %v362_v4 = vsel %vm357_vm2, %v355_v2, 0  ;;  %689 = vmatprep.mubr.msk.bf16.mxu0 %vm797_vm3, %v796_v3  ;;  %v354_v5 = vld [vmem:[%s301_s14] sm:$0xf]  ;;  %s678_s6 = sshll.u32 %s868_s28, 3  ;;  %v407_v9 = vstv %s677_s29  ;;  %v798_v19 = vmov 0   ;;  %vm438_vm5 = vcmask 7168  }
  0x23   : > { %688 = vmatpush3.bf16.xpose.msra.mxu0 %v362_v4  ;;  %693 = vmatprep.subr.bf16.mxu1 %v796_v3  ;;  %v405_v7 = vshrl.u32 %v404_v6, 7  ;;  %v410_v8 = vand.u32 127, %v404_v6  ;;  %v412_v10 = vstv %s678_s6  ;;  %v356_v24 = vld [vmem:[%s883_s21] sm:$0xf]  ;;  %vm451_vm6 = vcmask 1043456  }
  0x24   : > { %695 = vmatprep.mubr.msk.bf16.mxu1 %vm797_vm3, %v796_v3  ;;  %745 = vset.pattern.permute.xlu0 %v798_v19  ;;  %v453_v25 = vsel %vm451_vm6, %v356_v24, 0 }
  0x25   : > { %v408_v11 = vadd.s32 %v407_v9, %v405_v7  ;;  %v413_v12 = vadd.s32 %v412_v10, %v410_v8  ;;  %746 = vset.pattern.permute.xlu1 %v798_v19  ;;  %694 = vmatpush3.bf16.msra.mxu1 %v453_v25 }
  0x26   : > { %v416_v20 = vld [vmem:[#allocation2] sm:$0xff]  ;;  %v432_v34 = vld [vmem:[#allocation3] sm:$0xff] }
  0x27   : > { %vm414_vm4 = vcmp.le.s32.totalorder %v413_v12, %v408_v11  ;;  %v440_v38 = vld [vmem:[#allocation4] sm:$0xff] }
  0x2a   : > { %690 = vmatmul.mubr.msk.bf16.vlgmr.msra.gmra.mxu0 %vm357_vm2, %v354_v5 }
  0xea   : > { %v398_v13 = vpop.f32.mrf.mxu0 }
  0xeb   : > { %v415_v14 = vsel %vm414_vm4, %v398_v13, -1e+30 }
  0xec   : > { %v691_v15 = vpop.f32.mrf.mxu0  ;;  %v417_v16 = vsel %vm357_vm2, %v415_v14, -inf }
  0xed   : > { %418 = vmax.xlane.f32.xlu0 %v417_v16 }
  0xee   : > { %v401_v17 = vpop.f32.mrf.mxu0 }
  0xf0   : > { %v692_v18 = vpop.f32.mrf.mxu0 }
 0x176   : > { %v419_v21 = vpop.xlane.xlu0 %418 }
 0x177   : > { %v420_v22 = vmax.f32 %v416_v20, %v419_v21 }
 0x179   : > { %v421_v23 = vsub.f32 %v416_v20, %v420_v22  ;;  %497 = vst.msk [vmem:[#allocation2] sm:$0xff] %vm438_vm5, %v420_v22  ;;  %426 = vperm.xlu0 %745, %v420_v22  }
 0x17b   : > { %v422_v30 = vmul.f32 1.442695, %v421_v23 }
 0x1f4   : > { %v427_v26 = vpop.permute.xlu0 %426 }
 0x1f5   : > { %v429_v27 = vsub.f32 %v415_v14, %v427_v26 }
 0x1f7   : > { %v430_v28 = vmul.f32 1.442695, %v429_v27 }
 0x1f9   : > { %747 = vpow2.f32 %v430_v28 }
 0x1fa   : > { %749 = vpow2.f32 %v422_v30 }
 0x206   : > { %v748_v29 = vpop.eup %747 }
 0x207   : > { %v434_v31 = vsel %vm357_vm2, %v748_v29, 0.0  ;;  %v447_v32 = vpack.c.bf16 %v748_v29, %v748_v29  ;;  %v750_v33 = vpop.eup %749 }
 0x208   : > { %435 = vadd.xlane.f32.xlu1 %v434_v31  ;;  %v433_v35 = vmul.f32 %v750_v33, %v432_v34 }
 0x209   : > { %696 = vmatmul.mubr.msk.bf16.vlgmr.msra.gmra.mxu1 %vm357_vm2, %v447_v32 }
 0x219   : > { %443 = vperm.xlu1 %746, %v750_v33  }
 0x291   : > { %v436_v36 = vpop.xlane.xlu1 %435 }
 0x292   : > { %v437_v37 = vadd.f32 %v436_v36, %v433_v35 }
 0x294   : > { %439 = vst.msk [vmem:[#allocation3] sm:$0xff] %vm438_vm5, %v437_v37 }
 0x295   : > { %v444_v39 = vpop.permute.xlu1 %443 }
 0x296   : > { %v446_v40 = vmul.f32 %v444_v39, %v440_v38 }
 0x2c9   : > { %v489_v41 = vpop.f32.mrf.mxu1 }
 0x2ca   : > { %v495_v42 = vadd.f32 %v489_v41, %v446_v40 }
 0x2cb   : > { %v697_v43 = vpop.f32.mrf.mxu1  ;;  %501 = sbr.rel (%p680_p10) target bundleno = 864 (0x360), region = 40 }
 0x2cc   : > { %496 = vst.msk [vmem:[#allocation4] sm:$0xff] %vm357_vm2, %v495_v42 }
 0x2cd   : > { %v492_v44 = vpop.f32.mrf.mxu1 }
 0x2cf   : > { %v698_v45 = vpop.f32.mrf.mxu1 }
 0x2d0   : > { %v502_v46 = vld [vmem:[#allocation3] sm:$0xff]  ;;  %v799_v47 = vmov 0   ;;  %vm512_vm7 = vcmask 60416  }
 0x2d1   : > { %751 = vset.pattern.permute.xlu0 %v799_v47  ;;  %752 = vrcp.f32 %v502_v46 }
 0x2d3   : > { %v504_v49 = vld [vmem:[#allocation4] sm:$0xff] }
 0x2de   : > { %v753_v48 = vpop.eup %752 }
 0x2df   : > { %507 = vperm.xlu0 %751, %v753_v48  }
 0x35a   : > { %v508_v50 = vpop.permute.xlu0 %507 }
 0x35b   : > { %v510_v51 = vmul.f32 %v508_v50, %v504_v49 }
 0x35d   : > { %v511_v52 = vpack.c.bf16 %v510_v51, %v510_v51 }
 0x35f   : > { %513 = vst.msk [vmem:[%s888_s22] sm:$0xf] %vm512_vm7, %v511_v52 }
 0x360 PF: > { %s17_s26 = sadd.s32 1, %s792_s26   ;;  %s926_s22 = smov %s784_s24 }
 0x361   : > { %p14_p11 = scmp.ge.s32.totalorder %s17_s26, 10   ;;  %s927_s23 = smov %s788_s25 }
 0x362   : > { %s928_s24 = smov %s931_s0  ;;  %s929_s25 = smov %s935_s1 }
 0x363   :  { %16 = sbr.rel (!%p14_p11) target bundleno = 4 (0x4), region = 76 }

</bundles_post_ra>
